<compile_context>
chip_gen: v7x
topology: tpu7x:2x2x1
jax: 0.10.0
libtpu: 0.0.40
codegen_flags: <defaults>
</compile_context>

<pallas_src>
import functools

import jax
import jax.numpy as jnp
from jax.experimental import pallas as pl
from jax.experimental.pallas import tpu as pltpu

_LANE = 128
_SUBLANE = 8
_TARGET_BLOCK_BYTES = 4 * 1024 * 1024     # ~4 MiB per input block per buffer
_VMEM_LIMIT_BYTES = 40 * 1024 * 1024      # 2 in x 2 buf x 4 MiB = 16 MiB used


def _num_tensorcores() -> int:
    """Best-effort TensorCore-per-device count (megacore chips report 2)."""
    try:
        kind = jax.devices()[0].device_kind.lower()
    except Exception:  # pragma: no cover - defensive
        return 1
    if "lite" in kind or "v5e" in kind or "v6" in kind or "v2" in kind or "v3" in kind:
        return 1
    if "v4" in kind or "v5" in kind or "v7" in kind:
        return 2
    return 1


def _pick_tile_rows(rows: int, itemsize: int) -> int:
    """Rows per block: ~4 MiB per block, always a multiple of 8 sublanes."""
    max_rows = _TARGET_BLOCK_BYTES // (_LANE * itemsize)
    max_rows = max(_SUBLANE, (max_rows // _SUBLANE) * _SUBLANE)
    if rows >= max_rows:
        return max_rows
    # Small input: one block; round up to a sublane multiple (block may
    # overhang the array; overhang rows are masked in-kernel).
    return pl.cdiv(rows, _SUBLANE) * _SUBLANE


def _pick_acc_rows(tile_rows: int) -> int:
    """Accumulator rows: widest of {32,16,8} dividing the tile (VALU chains)."""
    for cand in (32, 16, 8):
        if tile_rows % cand == 0:
            return cand
    return _SUBLANE  # unreachable: tile_rows is always a multiple of 8


def _prepare_operand(x):
    """Lane-dense (rows, 128) view of x in its ORIGINAL dtype (zero-copy when
    numel is a multiple of 128)."""
    n_elems = int(x.size)
    flat = x.reshape(-1)
    rem = n_elems % _LANE
    if rem:
        # TODO(synk): a dedicated masked 1-D tail block would remove this rare
        # pad copy; every realistic conv feature map is a multiple of 128.
        flat = jnp.pad(flat, (0, _LANE - rem))
    rows = flat.shape[0] // _LANE
    return flat.reshape(rows, _LANE), rows, n_elems


def _mse_partial_kernel(x_ref, t_ref, o_ref, acc_ref, *,
                        tile_rows, acc_rows, blocks_per_split,
                        total_rows, need_mask):
    """Accumulate per-lane partial sums of (x - t)^2 into an (acc_rows, 128)
    f32 buffer.  Cross-lane/sublane reduction is deferred to the wrapper."""
    i = pl.program_id(1)  # reduction axis (innermost)

    @pl.when(i == 0)
    def _():
        acc_ref[...] = jnp.zeros_like(acc_ref)

    # Upcast per tile: bf16 inputs stay bf16 in HBM (half the DMA bytes).
    d = x_ref[...].astype(jnp.float32) - t_ref[...].astype(jnp.float32)
    sq = d * d

    def _fold(v):
        # (tile_rows,128) -> (tile_rows/acc_rows, acc_rows, 128).sum(0):
        # groups whole (8,128) tiles, so the reshape is a layout-preserving
        # view; the sum is pure VPU adds into acc_rows/8 independent chains.
        return v.reshape(tile_rows // acc_rows, acc_rows, _LANE).sum(axis=0)

    if need_mask:
        # Only boundary (ragged / clamped-duplicate) tiles pay the mask cost.
        c = pl.program_id(0)
        row0 = (c * blocks_per_split + i) * tile_rows
        is_boundary = row0 + tile_rows > total_rows

        @pl.when(jnp.logical_not(is_boundary))
        def _():
            acc_ref[...] += _fold(sq)

        @pl.when(is_boundary)
        def _():
            rid = jax.lax.broadcasted_iota(jnp.int32, (tile_rows, _LANE), 0) + row0
            # Keep this a SELECT (not multiply-by-mask): overhang rows hold
            # unspecified VMEM contents and must not propagate NaN/Inf.
            acc_ref[...] += _fold(jnp.where(rid < total_rows, sq, 0.0))
    else:
        acc_ref[...] += _fold(sq)

    @pl.when(i == blocks_per_split - 1)
    def _():
        o_ref[...] = acc_ref[...]


def _mse_from_prepared(x2, t2, rows, n_elems):
    """mean((x - t)^2) given prepared (rows, 128) views."""
    assert x2.shape == (rows, _LANE) and t2.shape == (rows, _LANE)
    itemsize = x2.dtype.itemsize
    tile_rows = _pick_tile_rows(rows, itemsize)
    acc_rows = _pick_acc_rows(tile_rows)
    num_blocks = pl.cdiv(rows, tile_rows)

    # Shard the reduction across TensorCores only where it can help.
    n_split = max(1, min(_num_tensorcores(), num_blocks))
    blocks_per_split = pl.cdiv(num_blocks, n_split)
    # Mask needed if the last block overhangs or the split duplicates a block.
    need_mask = (n_split * blocks_per_split * tile_rows) != rows

    if n_split * blocks_per_split == num_blocks:
        in_index = lambda c, i: (c * blocks_per_split + i, 0)
    else:
        # Clamp duplicated trailing blocks onto the last valid block; their
        # contribution is zeroed by the in-kernel row mask.
        last_block = num_blocks - 1
        in_index = lambda c, i: (jnp.minimum(c * blocks_per_split + i, last_block), 0)

    kernel = functools.partial(
        _mse_partial_kernel,
        tile_rows=tile_rows,
        acc_rows=acc_rows,
        blocks_per_split=blocks_per_split,
        total_rows=rows,
        need_mask=need_mask,
    )

    partials = pl.pallas_call(
        kernel,
        out_shape=jax.ShapeDtypeStruct((n_split * acc_rows, _LANE), jnp.float32),
        grid_spec=pltpu.PrefetchScalarGridSpec(
            num_scalar_prefetch=0,
            grid=(n_split, blocks_per_split),
            in_specs=[
                pl.BlockSpec((tile_rows, _LANE), in_index),
                pl.BlockSpec((tile_rows, _LANE), in_index),
            ],
            out_specs=pl.BlockSpec((acc_rows, _LANE), lambda c, i: (c, 0)),
            scratch_shapes=[pltpu.VMEM((acc_rows, _LANE), jnp.float32)],
        ),
        compiler_params=pltpu.CompilerParams(
            dimension_semantics=("parallel", "arbitrary"),
            vmem_limit_bytes=_VMEM_LIMIT_BYTES,
        ),
    )(x2, t2)

    # Single tiny cross-lane reduce + 1/N scale outside the hot loop.
    return jnp.sum(partials) * jnp.float32(1.0 / n_elems)


def mse_loss_pallas(x, target):
    """mean((x - target)^2) with the reduction done in a Pallas TPU kernel."""
    assert x.shape == target.shape, (x.shape, target.shape)
    x2, rows, n_elems = _prepare_operand(x)
    t2, _, _ = _prepare_operand(target)
    return _mse_from_prepared(x2, t2, rows, n_elems)


class ContentLoss:
    """JAX/Pallas port of the PyTorch ContentLoss module's forward pass."""

    def __init__(self, strength, normalize):
        self.strength = strength
        self.normalize = normalize  # only affects backward grads; no forward effect
        self.mode = "None"
        self.target = None
        self._target_prepared = None  # cached (rows,128) view + metadata
        self.loss = None

    def __call__(self, x):
        if self.mode == "loss":
            assert self._target_prepared is not None, "capture target first"
            t2, t_rows, t_n = self._target_prepared
            x2, rows, n_elems = _prepare_operand(x)
            assert (rows, n_elems) == (t_rows, t_n), "input/target shape mismatch"
            loss = _mse_from_prepared(x2, t2, rows, n_elems)
            # ScaleGradients.apply is identity in the forward pass.
            self.loss = loss * jnp.float32(self.strength)
        elif self.mode == "capture":
            self.target = jax.lax.stop_gradient(x)
            # Flatten/prepare once; reused zero-copy on every loss evaluation.
            self._target_prepared = _prepare_operand(self.target)
        return x


if __name__ == "__main__":
    key = jax.random.PRNGKey(0)
    k1, k2, k3, k4, k5, k6 = jax.random.split(key, 6)

    # Primary demo: NCHW conv features, matching the PyTorch module usage.
    B, C, H, W = 2, 4, 16, 16
    target_feat = jax.random.normal(k1, (B, C, H, W), dtype=jnp.float32)
    input_feat = jax.random.normal(k2, (B, C, H, W), dtype=jnp.float32)

    module = ContentLoss(strength=5.0, normalize=True)

    module.mode = "capture"
    module(target_feat)

    module.mode = "loss"
    out = module(input_feat)
    jax.block_until_ready(out)
    jax.block_until_ready(module.loss)

    ref_loss = jnp.mean((input_feat - target_feat) ** 2) * 5.0
    assert out.shape == input_feat.shape
    assert jnp.allclose(out, input_feat)  # forward returns input unchanged
    assert jnp.allclose(module.loss, ref_loss, rtol=1e-5, atol=1e-6), (
        module.loss, ref_loss)

    # Multi-block + ragged last block: rows = 9216, tile_rows = 8192 exercises
    # the gated boundary-mask branch (and the core split on multi-TC chips).
    a = jax.random.normal(k3, (2, 64, 96, 96), dtype=jnp.float32)
    b = jax.random.normal(k4, (2, 64, 96, 96), dtype=jnp.float32)
    got = mse_loss_pallas(a, b)
    jax.block_until_ready(got)
    want = jnp.mean((a - b) ** 2)
    assert jnp.allclose(got, want, rtol=1e-4, atol=1e-5), (got, want)

    # bf16 inputs stay bf16 in HBM and are upcast per tile inside the kernel.
    a16 = jax.random.normal(k5, (2, 40, 64, 64), dtype=jnp.float32).astype(jnp.bfloat16)
    b16 = jax.random.normal(k6, (2, 40, 64, 64), dtype=jnp.float32).astype(jnp.bfloat16)
    got16 = mse_loss_pallas(a16, b16)
    jax.block_until_ready(got16)
    want16 = jnp.mean((a16.astype(jnp.float32) - b16.astype(jnp.float32)) ** 2)
    assert jnp.allclose(got16, want16, rtol=1e-4, atol=1e-5), (got16, want16)

    # Rare non-multiple-of-128 size: pad fallback + single overhanging block.
    c1 = jax.random.normal(k5, (3, 5, 7, 11), dtype=jnp.float32)
    c2 = jax.random.normal(k6, (3, 5, 7, 11), dtype=jnp.float32)
    got_r = mse_loss_pallas(c1, c2)
    jax.block_until_ready(got_r)
    want_r = jnp.mean((c1 - c2) ** 2)
    assert jnp.allclose(got_r, want_r, rtol=1e-5, atol=1e-6), (got_r, want_r)

    print("KERNEL_OK")
</pallas_src>

<mosaic_0001>
module attributes {stable_mosaic.version = 11 : i64} {
  func.func @_mse_partial_kernel(%arg0: i32, %arg1: i32, %arg2: memref<16x128xf32, #tpu.memory_space<vmem>>, %arg3: memref<16x128xf32, #tpu.memory_space<vmem>>, %arg4: memref<16x128xf32, #tpu.memory_space<vmem>>, %arg5: memref<16x128xf32, #tpu.memory_space<vmem>>) attributes {dimension_semantics = [#tpu.dimension_semantics<parallel>, #tpu.dimension_semantics<arbitrary>], iteration_bounds = array<i64: 1, 1>, scalar_prefetch = 0 : i64, scratch_operands = 1 : i64, tpu.core_type = #tpu.core_type<tc>, window_params = [{transform_indices = @transform_0, window_bounds = array<i64: 16, 128>}, {transform_indices = @transform_1, window_bounds = array<i64: 16, 128>}, {transform_indices = @transform_2, window_bounds = array<i64: 16, 128>}]} {
    %c0_i32 = arith.constant 0 : i32
    %0 = arith.cmpi eq, %arg1, %c0_i32 : i32
    %1 = arith.extui %0 : i1 to i32
    %c0_i32_0 = arith.constant 0 : i32
    %2 = arith.cmpi ne, %1, %c0_i32_0 : i32
    scf.if %2 {
      %cst_10 = arith.constant 0.000000e+00 : f32
      %15 = vector.broadcast %cst_10 : f32 to vector<16x128xf32>
      %c0_11 = arith.constant 0 : index
      %c0_12 = arith.constant 0 : index
      %16 = vector.load %arg5[%c0_11, %c0_12] : memref<16x128xf32, #tpu.memory_space<vmem>>, vector<16x128xf32>
      tpu.vector_store %arg5[%c0_11, %c0_12], %15 {strides = array<i32>} : memref<16x128xf32, #tpu.memory_space<vmem>>, vector<16x128xf32>,
    } else {
    }
    %c0 = arith.constant 0 : index
    %c0_1 = arith.constant 0 : index
    %3 = vector.load %arg2[%c0, %c0_1] : memref<16x128xf32, #tpu.memory_space<vmem>>, vector<16x128xf32>
    %c0_2 = arith.constant 0 : index
    %c0_3 = arith.constant 0 : index
    %4 = vector.load %arg3[%c0_2, %c0_3] : memref<16x128xf32, #tpu.memory_space<vmem>>, vector<16x128xf32>
    %5 = arith.subf %3, %4 : vector<16x128xf32>
    %6 = arith.mulf %5, %5 : vector<16x128xf32>
    %c0_4 = arith.constant 0 : index
    %c0_5 = arith.constant 0 : index
    %7 = vector.load %arg5[%c0_4, %c0_5] : memref<16x128xf32, #tpu.memory_space<vmem>>, vector<16x128xf32>
    %8 = vector.shape_cast %6 : vector<16x128xf32> to vector<1x16x128xf32>
    %cst = arith.constant dense<0.000000e+00> : vector<16x128xf32>
    %9 = vector.multi_reduction <add>, %8, %cst [0] : vector<1x16x128xf32> to vector<16x128xf32>
    %10 = arith.addf %7, %9 : vector<16x128xf32>
    %c0_6 = arith.constant 0 : index
    %c0_7 = arith.constant 0 : index
    %11 = vector.load %arg5[%c0_6, %c0_7] : memref<16x128xf32, #tpu.memory_space<vmem>>, vector<16x128xf32>
    tpu.vector_store %arg5[%c0_6, %c0_7], %10 {strides = array<i32>} : memref<16x128xf32, #tpu.memory_space<vmem>>, vector<16x128xf32>,
    %c0_i32_8 = arith.constant 0 : i32
    %12 = arith.cmpi eq, %arg1, %c0_i32_8 : i32
    %13 = arith.extui %12 : i1 to i32
    %c0_i32_9 = arith.constant 0 : i32
    %14 = arith.cmpi ne, %13, %c0_i32_9 : i32
    scf.if %14 {
      %c0_10 = arith.constant 0 : index
      %c0_11 = arith.constant 0 : index
      %15 = vector.load %arg5[%c0_10, %c0_11] : memref<16x128xf32, #tpu.memory_space<vmem>>, vector<16x128xf32>
      %c0_12 = arith.constant 0 : index
      %c0_13 = arith.constant 0 : index
      %16 = vector.load %arg4[%c0_12, %c0_13] : memref<16x128xf32, #tpu.memory_space<vmem>>, vector<16x128xf32>
      tpu.vector_store %arg4[%c0_12, %c0_13], %15 {strides = array<i32>} : memref<16x128xf32, #tpu.memory_space<vmem>>, vector<16x128xf32>,
    } else {
    }
    return
  }
  func.func @transform_0(%arg0: i32, %arg1: i32) -> (i32, i32) {
    %c1_i32 = arith.constant 1 : i32
    %0 = arith.muli %arg0, %c1_i32 : i32
    %1 = arith.addi %0, %arg1 : i32
    %c0_i32 = arith.constant 0 : i32
    %c0_i32_0 = arith.constant 0 : i32
    return %1, %c0_i32 : i32, i32
  }
  func.func @transform_1(%arg0: i32, %arg1: i32) -> (i32, i32) {
    %c1_i32 = arith.constant 1 : i32
    %0 = arith.muli %arg0, %c1_i32 : i32
    %1 = arith.addi %0, %arg1 : i32
    %c0_i32 = arith.constant 0 : i32
    %c0_i32_0 = arith.constant 0 : i32
    return %1, %c0_i32 : i32, i32
  }
  func.func @transform_2(%arg0: i32, %arg1: i32) -> (i32, i32) {
    %c0_i32 = arith.constant 0 : i32
    %c0_i32_0 = arith.constant 0 : i32
    return %arg0, %c0_i32 : i32, i32
  }
}

</mosaic_0001>

<bundles_post_ra>
// kernel: tpu_custom_call.1
= control target key start
LH: loop header
LB: loop body
LE: loop exit
PB: predicated region body
PF: predicated region fallthrough
CT: control target
= control target key end

     0   :  { %7 = vsyncpa [#allocation4], 0  ;;  %s241_s0 = inlined_call_operand.hbm [shape: f32[16,128], index: 0, kind: input, shape index: {}]   ;;  %s242_s1 = inlined_call_operand.hbm [shape: f32[16,128], index: 1, kind: input, shape index: {}]   ;;  %s243_s2 = inlined_call_operand.hbm [shape: f32[16,128], index: 2, kind: output, shape index: {}]  }
   0x1   :  { %8 = vsyncpa [#allocation7], 0 }
   0x2   :  { %9 = vsyncpa [#allocation5], 0  ;;  %s176_s9 = smov [#allocation3]   ;;  %s104_s13 = scalar_lea.hbm %s241_s0, 256 }
   0x3   :  { %s19_s10 = sshll.u32 %s176_s9, 4  ;;  %p105_p0 = scmp.ne.s32.totalorder %s241_s0, %s104_s13  ;;  %s20_s10 = int_to_ptr.vmem [resolvable:$true] %s19_s10 }
   0x4   :  { %p108_p1 = scmp.lt.u32.totalorder %s104_s13, %s241_s0 }
   0x6   :  { %p110_p2 = pnand %p108_p1, %p105_p0 }
   0x8   :  { %113 = shalt.err (!%p110_p2)
}
   0x9   :  { %s114_s18 = scalar_lea.vmem %s20_s10, 256  ;;  %p119_p4 = scmp.lt.s32.totalorder %s20_s10, %s20_s10 }
   0xa   :  { %p115_p3 = scmp.ne.s32.totalorder %s20_s10, %s114_s18  ;;  %p120_p5 = scmp.lt.s32.totalorder %s114_s18, %s114_s18 }
   0xc   :  { %p121_p6 = por %p120_p5, %p119_p4 }
   0xe   :  { %p122_p7 = pnand %p121_p6, %p115_p3 }
  0x10   :  { %125 = shalt.err (!%p122_p7)
}
  0x11   :  { %s177_s19 = smov 128   ;;  %s178_s20 = smov 8  }
  0x12   :  { %25 = dma.hbm_to_vmem [thread:$0]  %s241_s0, 256, %s20_s10, [#allocation4], %s177_s19, %s177_s19, %s178_s20  }
  0x13   :  { %s179_s23 = smov [#allocation6]   ;;  %s126_s27 = scalar_lea.hbm %s242_s1, 256 }
  0x14   :  { %s35_s24 = sshll.u32 %s179_s23, 4  ;;  %p127_p8 = scmp.ne.s32.totalorder %s242_s1, %s126_s27  ;;  %s36_s24 = int_to_ptr.vmem [resolvable:$true] %s35_s24 }
  0x15   :  { %p130_p9 = scmp.lt.u32.totalorder %s126_s27, %s242_s1 }
  0x17   :  { %p132_p10 = pnand %p130_p9, %p127_p8 }
  0x19   :  { %135 = shalt.err (!%p132_p10)
}
  0x1a   :  { %s136_s4 = scalar_lea.vmem %s36_s24, 256  ;;  %p141_p12 = scmp.lt.s32.totalorder %s36_s24, %s36_s24 }
  0x1b   :  { %p137_p11 = scmp.ne.s32.totalorder %s36_s24, %s136_s4  ;;  %p142_p13 = scmp.lt.s32.totalorder %s136_s4, %s136_s4 }
  0x1d   :  { %p143_p0 = por %p142_p13, %p141_p12 }
  0x1f   :  { %p144_p1 = pnand %p143_p0, %p137_p11 }
  0x21   :  { %147 = shalt.err (!%p144_p1)
}
  0x22   :  { %41 = dma.hbm_to_vmem [thread:$0]  %s242_s1, 256, %s36_s24, [#allocation7], %s177_s19, %s177_s19, %s178_s20  }
  0x23   :  { %170 = dma.done.wait [#allocation4], 256  }
  0x24   :  { %171 = vsyncadd [#allocation4], 4294967040 }
  0x25   :  { %172 = dma.done.wait [#allocation7], 256  }
  0x26   :  { %173 = vsyncadd [#allocation7], 4294967040  ;;  %v58_v0 = vld [vmem:[#allocation3] sm:$0xff]  ;;  %v60_v1 = vld [vmem:[#allocation6] sm:$0xff]  ;;  %s180_s6 = smov [#allocation8]  }
  0x27   :  { %v59_v2 = vld [vmem:[#allocation3 + $0x8] sm:$0xff]  ;;  %v62_v3 = vsub.f32 %v58_v0, %v60_v1  ;;  %v61_v4 = vld [vmem:[#allocation6 + $0x8] sm:$0xff]  ;;  %s86_s7 = sshll.u32 %s180_s6, 4  ;;  %s87_s7 = int_to_ptr.vmem [resolvable:$true] %s86_s7 }
  0x28   :  { %v63_v5 = vsub.f32 %v59_v2, %v61_v4  ;;  %s148_s8 = scalar_lea.vmem %s87_s7, 256  ;;  %p153_p3 = scmp.lt.s32.totalorder %s87_s7, %s87_s7 }
  0x29   :  { %v64_v6 = vmul.f32 %v62_v3, %v62_v3  ;;  %p149_p2 = scmp.ne.s32.totalorder %s87_s7, %s148_s8  ;;  %p154_p4 = scmp.lt.s32.totalorder %s148_s8, %s148_s8 }
  0x2a   :  { %v65_v7 = vmul.f32 %v63_v5, %v63_v5 }
  0x2b   :  { %79 = vst [vmem:[#allocation8] sm:$0xff] %v64_v6  ;;  %p155_p5 = por %p154_p4, %p153_p3 }
  0x2c   :  { %80 = vst [vmem:[#allocation8 + $0x8] sm:$0xff] %v65_v7 }
  0x2d   :  { %p156_p6 = pnand %p155_p5, %p149_p2 }
  0x2f   :  { %159 = shalt.err (!%p156_p6)
}
  0x30   :  { %s160_s10 = scalar_lea.hbm %s243_s2, 256 }
  0x31   :  { %p161_p7 = scmp.ne.s32.totalorder %s243_s2, %s160_s10  ;;  %p164_p8 = scmp.lt.u32.totalorder %s160_s10, %s243_s2 }
  0x33   :  { %p166_p9 = pnand %p164_p8, %p161_p7 }
  0x35   :  { %169 = shalt.err (!%p166_p9)
}
  0x36   :  { %92 = dma.vmem_to_hbm [thread:$0]  %s87_s7, 256, %s243_s2, [#allocation5], %s177_s19, %s177_s19, %s178_s20  }
  0x37   :  { %174 = dma.done.wait [#allocation5], 256  }
  0x38   :  { %175 = vsyncadd [#allocation5], 4294967040 }
  0x39   :  { %96 = vsyncpa [#allocation4], 1 }
  0x3a   :  { %97 = vsyncpa [#allocation7], 1 }
  0x3b   :  { %98 = vsyncpa [#allocation5], 1 }

</bundles_post_ra>
